<compile_context>
chip_gen: v7x
topology: tpu7x:2x2x1
jax: 0.10.0
libtpu: 0.0.40
codegen_flags: <defaults>
</compile_context>

<pallas_src>
import functools

import jax
import jax.numpy as jnp
from jax.experimental import pallas as pl
from jax.experimental.pallas import tpu as pltpu


_ACTIVATIONS = {
    "ReLU": lambda v: jnp.maximum(v, 0.0),
    "GELU": lambda v: jax.nn.gelu(v, approximate=False),   # torch nn.GELU (exact)
}


# ---------------------------------------------------------------------------
# Fused Pallas kernel (whole network per batch element)
# ---------------------------------------------------------------------------

def _make_fused_kernel(block_meta, *, k, T, row0, activation):
    act = _ACTIVATIONS[activation]

    def kernel(*refs):
        # refs = (x_ref, <per-block weight refs...>, w_lin, b_lin, o_ref, pad_ref)
        x_ref = refs[0]
        o_ref = refs[-2]
        pad_ref = refs[-1]          # VMEM scratch (row0 + T, C_max), time-major
        w_refs = refs[1:-2]

        # Zero the causal left-padding rows once per grid step (aligned store).
        pad_ref[0:row0, :] = jnp.zeros((row0, pad_ref.shape[1]), jnp.float32)

        h = x_ref[0].astype(jnp.float32)            # (T, Cin) time-major
        wi = 0
        for meta in block_meta:
            d = meta["dilation"]
            cin = meta["cin"]
            cout = meta["cout"]
            w1, b1, w2, b2 = (w_refs[wi], w_refs[wi + 1],
                              w_refs[wi + 2], w_refs[wi + 3])
            wi += 4
            h_in = h

            def dilated_conv(x_tc, w_ref, b_ref, c_in, c_out):
                # Causal dilated conv: out[t] = sum_j W_j . x[t - (k-1-j)*d]
                # x lives at scratch rows [row0, row0+T); rows above are zero,
                # so the shifted window reads realize the causal left-padding.
                pad_ref[pl.ds(row0, T), pl.ds(0, c_in)] = x_tc
                acc = jnp.zeros((T, c_out), jnp.float32)
                for j in range(k):                              # static unroll
                    s = (k - 1 - j) * d
                    acc = acc + jnp.dot(
                        pad_ref[pl.ds(row0 - s, T), pl.ds(0, c_in)], w_ref[j],
                        preferred_element_type=jnp.float32)
                return act(acc + b_ref[...])

            h1 = dilated_conv(h_in, w1, b1, cin, cout)   # conv1 + chomp + act
            h2 = dilated_conv(h1, w2, b2, cout, cout)    # conv2 + chomp + act

            if meta["has_down"]:                         # 1x1 downsample branch
                wd, bd = w_refs[wi], w_refs[wi + 1]
                wi += 2
                res = jnp.dot(h_in, wd[...],
                              preferred_element_type=jnp.float32) + bd[...]
            else:
                res = h_in
            h = jnp.maximum(h2 + res, 0.0)               # residual add + ReLU

        # Final Linear on the last time step (== torch linear(x[:, :, -1])).
        w_lin, b_lin = w_refs[wi], w_refs[wi + 1]
        y = jnp.dot(h[T - 1:T, :], w_lin[...],
                    preferred_element_type=jnp.float32) + b_lin[...]
        o_ref[0] = y.astype(o_ref.dtype)

    return kernel


# ---------------------------------------------------------------------------
# Forward pass (LedvoTcn.forward) — single pallas_call
# ---------------------------------------------------------------------------

def ledvo_tcn_forward(params, x_nct, *, kernel_size, activation="ReLU"):
    """x_nct: (B, C_in, T) like the PyTorch module (NCW). Returns (B, output)."""
    k = kernel_size
    # Tiny boundary transpose NCW -> NTC so channels map to the lane axis.
    x = jnp.transpose(x_nct, (0, 2, 1)).astype(jnp.float32)     # (B, T, Cin)
    B, T, cin0 = x.shape

    blocks = params["blocks"]
    n_blocks = len(blocks)
    p_max = (k - 1) * (2 ** (n_blocks - 1))                     # max causal pad
    row0 = max(8, ((p_max + 7) // 8) * 8)                       # 8-aligned pad rows
    c_max = max([cin0] + [b["w1"].shape[-1] for b in blocks])

    def _map_x(b):
        return (b, 0, 0)

    def _map0_2d(b):
        return (0, 0)

    def _map0_3d(b):
        return (0, 0, 0)

    flat_args = [x]
    in_specs = [pl.BlockSpec((1, T, cin0), _map_x)]
    block_meta = []
    for i, blk in enumerate(blocks):
        cin = blk["w1"].shape[1]
        cout = blk["w1"].shape[2]
        has_down = blk["wd"] is not None
        block_meta.append(dict(dilation=2 ** i, cin=cin, cout=cout,
                               has_down=has_down))
        ws = [blk["w1"], blk["b1"], blk["w2"], blk["b2"]]
        if has_down:
            ws += [blk["wd"], blk["bd"]]
        for w in ws:
            flat_args.append(w)
            in_specs.append(pl.BlockSpec(
                tuple(w.shape), _map0_3d if w.ndim == 3 else _map0_2d))

    flat_args += [params["w_lin"], params["b_lin"]]
    in_specs += [pl.BlockSpec(tuple(params["w_lin"].shape), _map0_2d),
                 pl.BlockSpec(tuple(params["b_lin"].shape), _map0_2d)]

    out_dim = params["w_lin"].shape[1]
    kernel = _make_fused_kernel(block_meta, k=k, T=T, row0=row0,
                                activation=activation)

    out = pl.pallas_call(
        kernel,
        grid=(B,),
        in_specs=in_specs,
        out_specs=pl.BlockSpec((1, 1, out_dim), _map_x),
        out_shape=jax.ShapeDtypeStruct((B, 1, out_dim), jnp.float32),
        scratch_shapes=[pltpu.VMEM((row0 + T, c_max), jnp.float32)],
        compiler_params=pltpu.CompilerParams(
            dimension_semantics=("parallel",)),
    )(*flat_args)
    return out.reshape(B, out_dim)


# ---------------------------------------------------------------------------
# Parameters (deterministic synthetic init, mirrors the PyTorch shapes)
# ---------------------------------------------------------------------------

def _uniform(key, shape, bound):
    return jax.random.uniform(key, shape, jnp.float32, -bound, bound)


def _wn_effective(v, g):
    # torch weight_norm (dim=0): w = g * v / ||v||, norm over all dims but 0.
    norm = jnp.sqrt(jnp.sum(v * v, axis=(1, 2), keepdims=True))
    return g.reshape(-1, 1, 1) * v / norm


def make_params(key, input_size, output_size, num_channels, kernel_size):
    keys = iter(jax.random.split(key, 64))
    blocks = []
    c_in = input_size
    k = kernel_size
    for c_out in num_channels:
        # conv1 (weight-normed), v ~ N(0, 0.01), g initialized to ||v||
        v1 = 0.01 * jax.random.normal(next(keys), (c_out, c_in, k), jnp.float32)
        g1 = jnp.sqrt(jnp.sum(v1 * v1, axis=(1, 2)))
        w1 = _wn_effective(v1, g1)                      # == v1 at init
        b1 = _uniform(next(keys), (c_out,), 1.0 / (c_in * k) ** 0.5)
        # conv2
        v2 = 0.01 * jax.random.normal(next(keys), (c_out, c_out, k), jnp.float32)
        g2 = jnp.sqrt(jnp.sum(v2 * v2, axis=(1, 2)))
        w2 = _wn_effective(v2, g2)
        b2 = _uniform(next(keys), (c_out,), 1.0 / (c_out * k) ** 0.5)
        blk = {
            # torch conv weight (Cout, Cin, k) -> kernel layout (k, Cin, Cout)
            "w1": jnp.transpose(w1, (2, 1, 0)),
            "b1": b1.reshape(1, c_out),
            "w2": jnp.transpose(w2, (2, 1, 0)),
            "b2": b2.reshape(1, c_out),
        }
        if c_in != c_out:
            wd = 0.01 * jax.random.normal(next(keys), (c_out, c_in, 1), jnp.float32)
            bd = _uniform(next(keys), (c_out,), 1.0 / c_in ** 0.5)
            blk["wd"] = jnp.transpose(wd[:, :, 0], (1, 0))      # (Cin, Cout)
            blk["bd"] = bd.reshape(1, c_out)
        else:
            blk["wd"] = None
            blk["bd"] = None
        blocks.append(blk)
        c_in = c_out

    c_last = num_channels[-1]
    w_lin = 0.01 * jax.random.normal(next(keys), (output_size, c_last), jnp.float32)
    b_lin = _uniform(next(keys), (output_size,), 1.0 / c_last ** 0.5)
    return {
        "blocks": blocks,
        "w_lin": jnp.transpose(w_lin, (1, 0)),                  # (C_last, O)
        "b_lin": b_lin.reshape(1, output_size),
    }


# ---------------------------------------------------------------------------
# Pure-JAX reference (for a correctness cross-check; not the fast path)
# ---------------------------------------------------------------------------

def reference_forward(params, x_nct, *, kernel_size, activation="ReLU"):
    act = _ACTIVATIONS[activation]
    hp_prec = jax.lax.Precision.HIGHEST
    k = kernel_size
    x = jnp.transpose(x_nct, (0, 2, 1)).astype(jnp.float32)     # (B, T, C)
    B, T, _ = x.shape

    for i, blk in enumerate(params["blocks"]):
        d = 2 ** i
        pad = (k - 1) * d

        def causal_conv(h, w_kco, b):
            hp = jnp.pad(h, ((0, 0), (pad, 0), (0, 0)))
            acc = jnp.zeros((B, T, w_kco.shape[-1]), jnp.float32)
            for j in range(k):
                acc = acc + jnp.einsum("btc,co->bto",
                                       hp[:, j * d:j * d + T, :], w_kco[j],
                                       precision=hp_prec)
            return acc + b

        h1 = act(causal_conv(x, blk["w1"], blk["b1"]))
        h2 = act(causal_conv(h1, blk["w2"], blk["b2"]))
        if blk["wd"] is not None:
            res = jnp.einsum("btc,co->bto", x, blk["wd"],
                             precision=hp_prec) + blk["bd"]
        else:
            res = x
        x = jnp.maximum(h2 + res, 0.0)

    y = x[:, -1, :]                                             # torch x[:, :, -1]
    return jnp.dot(y, params["w_lin"], precision=hp_prec) + params["b_lin"]


# ---------------------------------------------------------------------------

if __name__ == "__main__":
    B = 2
    input_size = 4          # input channels
    T = 16                  # sequence length
    num_channels = [32, 32]
    kernel_size = 2
    output_size = 9
    # dropout = 0.2 -> identity at inference

    key = jax.random.PRNGKey(0)
    params = make_params(key, input_size, output_size, num_channels, kernel_size)

    x = jax.random.normal(jax.random.fold_in(key, 999),
                          (B, input_size, T), jnp.float32)      # NCW, like PyTorch

    fwd = jax.jit(functools.partial(ledvo_tcn_forward,
                                    kernel_size=kernel_size,
                                    activation="ReLU"))
    out = fwd(params, x)
    jax.block_until_ready(out)
    assert out.shape == (B, output_size), out.shape
    assert out.dtype == jnp.float32

    ref = reference_forward(params, x, kernel_size=kernel_size, activation="ReLU")
    err = float(jnp.max(jnp.abs(out - ref)))
    assert err < 1e-4, f"mismatch vs pure-JAX reference: max abs err {err}"
    print("KERNEL_OK")
</pallas_src>

<mosaic_0001>
module attributes {stable_mosaic.version = 11 : i64} {
  func.func @kernel(%arg0: i32, %arg1: memref<1x16x4xf32, #tpu.memory_space<vmem>>, %arg2: memref<2x4x32xf32, #tpu.memory_space<vmem>>, %arg3: memref<1x32xf32, #tpu.memory_space<vmem>>, %arg4: memref<2x32x32xf32, #tpu.memory_space<vmem>>, %arg5: memref<1x32xf32, #tpu.memory_space<vmem>>, %arg6: memref<4x32xf32, #tpu.memory_space<vmem>>, %arg7: memref<1x32xf32, #tpu.memory_space<vmem>>, %arg8: memref<2x32x32xf32, #tpu.memory_space<vmem>>, %arg9: memref<1x32xf32, #tpu.memory_space<vmem>>, %arg10: memref<2x32x32xf32, #tpu.memory_space<vmem>>, %arg11: memref<1x32xf32, #tpu.memory_space<vmem>>, %arg12: memref<32x9xf32, #tpu.memory_space<vmem>>, %arg13: memref<1x9xf32, #tpu.memory_space<vmem>>, %arg14: memref<1x1x9xf32, #tpu.memory_space<vmem>>, %arg15: memref<24x32xf32, #tpu.memory_space<vmem>>) attributes {dimension_semantics = [#tpu.dimension_semantics<parallel>], iteration_bounds = array<i64: 2>, scalar_prefetch = 0 : i64, scratch_operands = 1 : i64, tpu.core_type = #tpu.core_type<tc>, window_params = [{transform_indices = @transform_0, window_bounds = array<i64: 1, 16, 4>}, {pipeline_mode = #tpu.pipeline_mode<synchronous>, transform_indices = @transform_1, window_bounds = array<i64: 2, 4, 32>}, {pipeline_mode = #tpu.pipeline_mode<synchronous>, transform_indices = @transform_2, window_bounds = array<i64: 1, 32>}, {pipeline_mode = #tpu.pipeline_mode<synchronous>, transform_indices = @transform_3, window_bounds = array<i64: 2, 32, 32>}, {pipeline_mode = #tpu.pipeline_mode<synchronous>, transform_indices = @transform_4, window_bounds = array<i64: 1, 32>}, {pipeline_mode = #tpu.pipeline_mode<synchronous>, transform_indices = @transform_5, window_bounds = array<i64: 4, 32>}, {pipeline_mode = #tpu.pipeline_mode<synchronous>, transform_indices = @transform_6, window_bounds = array<i64: 1, 32>}, {pipeline_mode = #tpu.pipeline_mode<synchronous>, transform_indices = @transform_7, window_bounds = array<i64: 2, 32, 32>}, {pipeline_mode = #tpu.pipeline_mode<synchronous>, transform_indices = @transform_8, window_bounds = array<i64: 1, 32>}, {pipeline_mode = #tpu.pipeline_mode<synchronous>, transform_indices = @transform_9, window_bounds = array<i64: 2, 32, 32>}, {pipeline_mode = #tpu.pipeline_mode<synchronous>, transform_indices = @transform_10, window_bounds = array<i64: 1, 32>}, {pipeline_mode = #tpu.pipeline_mode<synchronous>, transform_indices = @transform_11, window_bounds = array<i64: 32, 9>}, {pipeline_mode = #tpu.pipeline_mode<synchronous>, transform_indices = @transform_12, window_bounds = array<i64: 1, 9>}, {transform_indices = @transform_13, window_bounds = array<i64: 1, 1, 9>}]} {
    %cst = arith.constant 0.000000e+00 : f32
    %0 = vector.broadcast %cst : f32 to vector<8x32xf32>
    %c0 = arith.constant 0 : index
    %c0_0 = arith.constant 0 : index
    %1 = vector.load %arg15[%c0, %c0_0] : memref<24x32xf32, #tpu.memory_space<vmem>>, vector<8x32xf32>
    tpu.vector_store %arg15[%c0, %c0_0], %0 {strides = array<i32>} : memref<24x32xf32, #tpu.memory_space<vmem>>, vector<8x32xf32>,
    %c0_1 = arith.constant 0 : index
    %c0_2 = arith.constant 0 : index
    %c0_3 = arith.constant 0 : index
    %2 = vector.load %arg1[%c0_1, %c0_2, %c0_3] : memref<1x16x4xf32, #tpu.memory_space<vmem>>, vector<1x16x4xf32>
    %3 = vector.shape_cast %2 : vector<1x16x4xf32> to vector<16x4xf32>
    %c8 = arith.constant 8 : index
    %c0_4 = arith.constant 0 : index
    %4 = vector.load %arg15[%c8, %c0_4] : memref<24x32xf32, #tpu.memory_space<vmem>>, vector<16x4xf32>
    tpu.vector_store %arg15[%c8, %c0_4], %3 {strides = array<i32>} : memref<24x32xf32, #tpu.memory_space<vmem>>, vector<16x4xf32>,
    %cst_5 = arith.constant 0.000000e+00 : f32
    %5 = vector.broadcast %cst_5 : f32 to vector<16x32xf32>
    %c7 = arith.constant 7 : index
    %c0_6 = arith.constant 0 : index
    %6 = vector.load %arg15[%c7, %c0_6] : memref<24x32xf32, #tpu.memory_space<vmem>>, vector<16x4xf32>
    %c0_7 = arith.constant 0 : index
    %c0_8 = arith.constant 0 : index
    %c0_9 = arith.constant 0 : index
    %7 = vector.load %arg2[%c0_7, %c0_8, %c0_9] : memref<2x4x32xf32, #tpu.memory_space<vmem>>, vector<1x4x32xf32>
    %8 = vector.shape_cast %7 : vector<1x4x32xf32> to vector<4x32xf32>
    %cst_10 = arith.constant dense<0.000000e+00> : vector<16x32xf32>
    %9 = tpu.matmul %6, %8, %cst_10 {dimension_numbers = #tpu.dot_dimension_numbers<[1], [0], [0], [1], [0, 0, 1, 1], [], []>} : vector<16x4xf32>, vector<4x32xf32>, vector<16x32xf32> -> vector<16x32xf32>
    %10 = arith.addf %5, %9 : vector<16x32xf32>
    %c8_11 = arith.constant 8 : index
    %c0_12 = arith.constant 0 : index
    %11 = vector.load %arg15[%c8_11, %c0_12] : memref<24x32xf32, #tpu.memory_space<vmem>>, vector<16x4xf32>
    %c1 = arith.constant 1 : index
    %c0_13 = arith.constant 0 : index
    %c0_14 = arith.constant 0 : index
    %12 = vector.load %arg2[%c1, %c0_13, %c0_14] : memref<2x4x32xf32, #tpu.memory_space<vmem>>, vector<1x4x32xf32>
    %13 = vector.shape_cast %12 : vector<1x4x32xf32> to vector<4x32xf32>
    %cst_15 = arith.constant dense<0.000000e+00> : vector<16x32xf32>
    %14 = tpu.matmul %11, %13, %cst_15 {dimension_numbers = #tpu.dot_dimension_numbers<[1], [0], [0], [1], [0, 0, 1, 1], [], []>} : vector<16x4xf32>, vector<4x32xf32>, vector<16x32xf32> -> vector<16x32xf32>
    %15 = arith.addf %10, %14 : vector<16x32xf32>
    %c0_16 = arith.constant 0 : index
    %c0_17 = arith.constant 0 : index
    %16 = vector.load %arg3[%c0_16, %c0_17] : memref<1x32xf32, #tpu.memory_space<vmem>>, vector<1x32xf32>
    %17 = vector.broadcast %16 : vector<1x32xf32> to vector<16x32xf32>
    %18 = arith.addf %15, %17 : vector<16x32xf32>
    %cst_18 = arith.constant 0.000000e+00 : f32
    %19 = vector.broadcast %cst_18 : f32 to vector<16x32xf32>
    %20 = arith.maximumf %18, %19 : vector<16x32xf32>
    %c8_19 = arith.constant 8 : index
    %c0_20 = arith.constant 0 : index
    %21 = vector.load %arg15[%c8_19, %c0_20] : memref<24x32xf32, #tpu.memory_space<vmem>>, vector<16x32xf32>
    tpu.vector_store %arg15[%c8_19, %c0_20], %20 {strides = array<i32>} : memref<24x32xf32, #tpu.memory_space<vmem>>, vector<16x32xf32>,
    %cst_21 = arith.constant 0.000000e+00 : f32
    %22 = vector.broadcast %cst_21 : f32 to vector<16x32xf32>
    %c7_22 = arith.constant 7 : index
    %c0_23 = arith.constant 0 : index
    %23 = vector.load %arg15[%c7_22, %c0_23] : memref<24x32xf32, #tpu.memory_space<vmem>>, vector<16x32xf32>
    %c0_24 = arith.constant 0 : index
    %c0_25 = arith.constant 0 : index
    %c0_26 = arith.constant 0 : index
    %24 = vector.load %arg4[%c0_24, %c0_25, %c0_26] : memref<2x32x32xf32, #tpu.memory_space<vmem>>, vector<1x32x32xf32>
    %25 = vector.shape_cast %24 : vector<1x32x32xf32> to vector<32x32xf32>
    %cst_27 = arith.constant dense<0.000000e+00> : vector<16x32xf32>
    %26 = tpu.matmul %23, %25, %cst_27 {dimension_numbers = #tpu.dot_dimension_numbers<[1], [0], [0], [1], [0, 0, 1, 1], [], []>} : vector<16x32xf32>, vector<32x32xf32>, vector<16x32xf32> -> vector<16x32xf32>
    %27 = arith.addf %22, %26 : vector<16x32xf32>
    %c8_28 = arith.constant 8 : index
    %c0_29 = arith.constant 0 : index
    %28 = vector.load %arg15[%c8_28, %c0_29] : memref<24x32xf32, #tpu.memory_space<vmem>>, vector<16x32xf32>
    %c1_30 = arith.constant 1 : index
    %c0_31 = arith.constant 0 : index
    %c0_32 = arith.constant 0 : index
    %29 = vector.load %arg4[%c1_30, %c0_31, %c0_32] : memref<2x32x32xf32, #tpu.memory_space<vmem>>, vector<1x32x32xf32>
    %30 = vector.shape_cast %29 : vector<1x32x32xf32> to vector<32x32xf32>
    %cst_33 = arith.constant dense<0.000000e+00> : vector<16x32xf32>
    %31 = tpu.matmul %28, %30, %cst_33 {dimension_numbers = #tpu.dot_dimension_numbers<[1], [0], [0], [1], [0, 0, 1, 1], [], []>} : vector<16x32xf32>, vector<32x32xf32>, vector<16x32xf32> -> vector<16x32xf32>
    %32 = arith.addf %27, %31 : vector<16x32xf32>
    %c0_34 = arith.constant 0 : index
    %c0_35 = arith.constant 0 : index
    %33 = vector.load %arg5[%c0_34, %c0_35] : memref<1x32xf32, #tpu.memory_space<vmem>>, vector<1x32xf32>
    %34 = vector.broadcast %33 : vector<1x32xf32> to vector<16x32xf32>
    %35 = arith.addf %32, %34 : vector<16x32xf32>
    %cst_36 = arith.constant 0.000000e+00 : f32
    %36 = vector.broadcast %cst_36 : f32 to vector<16x32xf32>
    %37 = arith.maximumf %35, %36 : vector<16x32xf32>
    %c0_37 = arith.constant 0 : index
    %c0_38 = arith.constant 0 : index
    %38 = vector.load %arg6[%c0_37, %c0_38] : memref<4x32xf32, #tpu.memory_space<vmem>>, vector<4x32xf32>
    %cst_39 = arith.constant dense<0.000000e+00> : vector<16x32xf32>
    %39 = tpu.matmul %3, %38, %cst_39 {dimension_numbers = #tpu.dot_dimension_numbers<[1], [0], [0], [1], [0, 0, 1, 1], [], []>} : vector<16x4xf32>, vector<4x32xf32>, vector<16x32xf32> -> vector<16x32xf32>
    %c0_40 = arith.constant 0 : index
    %c0_41 = arith.constant 0 : index
    %40 = vector.load %arg7[%c0_40, %c0_41] : memref<1x32xf32, #tpu.memory_space<vmem>>, vector<1x32xf32>
    %41 = vector.broadcast %40 : vector<1x32xf32> to vector<16x32xf32>
    %42 = arith.addf %39, %41 : vector<16x32xf32>
    %43 = arith.addf %37, %42 : vector<16x32xf32>
    %cst_42 = arith.constant 0.000000e+00 : f32
    %44 = vector.broadcast %cst_42 : f32 to vector<16x32xf32>
    %45 = arith.maximumf %43, %44 : vector<16x32xf32>
    %c8_43 = arith.constant 8 : index
    %c0_44 = arith.constant 0 : index
    %46 = vector.load %arg15[%c8_43, %c0_44] : memref<24x32xf32, #tpu.memory_space<vmem>>, vector<16x32xf32>
    tpu.vector_store %arg15[%c8_43, %c0_44], %45 {strides = array<i32>} : memref<24x32xf32, #tpu.memory_space<vmem>>, vector<16x32xf32>,
    %cst_45 = arith.constant 0.000000e+00 : f32
    %47 = vector.broadcast %cst_45 : f32 to vector<16x32xf32>
    %c6 = arith.constant 6 : index
    %c0_46 = arith.constant 0 : index
    %48 = vector.load %arg15[%c6, %c0_46] : memref<24x32xf32, #tpu.memory_space<vmem>>, vector<16x32xf32>
    %c0_47 = arith.constant 0 : index
    %c0_48 = arith.constant 0 : index
    %c0_49 = arith.constant 0 : index
    %49 = vector.load %arg8[%c0_47, %c0_48, %c0_49] : memref<2x32x32xf32, #tpu.memory_space<vmem>>, vector<1x32x32xf32>
    %50 = vector.shape_cast %49 : vector<1x32x32xf32> to vector<32x32xf32>
    %cst_50 = arith.constant dense<0.000000e+00> : vector<16x32xf32>
    %51 = tpu.matmul %48, %50, %cst_50 {dimension_numbers = #tpu.dot_dimension_numbers<[1], [0], [0], [1], [0, 0, 1, 1], [], []>} : vector<16x32xf32>, vector<32x32xf32>, vector<16x32xf32> -> vector<16x32xf32>
    %52 = arith.addf %47, %51 : vector<16x32xf32>
    %c8_51 = arith.constant 8 : index
    %c0_52 = arith.constant 0 : index
    %53 = vector.load %arg15[%c8_51, %c0_52] : memref<24x32xf32, #tpu.memory_space<vmem>>, vector<16x32xf32>
    %c1_53 = arith.constant 1 : index
    %c0_54 = arith.constant 0 : index
    %c0_55 = arith.constant 0 : index
    %54 = vector.load %arg8[%c1_53, %c0_54, %c0_55] : memref<2x32x32xf32, #tpu.memory_space<vmem>>, vector<1x32x32xf32>
    %55 = vector.shape_cast %54 : vector<1x32x32xf32> to vector<32x32xf32>
    %cst_56 = arith.constant dense<0.000000e+00> : vector<16x32xf32>
    %56 = tpu.matmul %53, %55, %cst_56 {dimension_numbers = #tpu.dot_dimension_numbers<[1], [0], [0], [1], [0, 0, 1, 1], [], []>} : vector<16x32xf32>, vector<32x32xf32>, vector<16x32xf32> -> vector<16x32xf32>
    %57 = arith.addf %52, %56 : vector<16x32xf32>
    %c0_57 = arith.constant 0 : index
    %c0_58 = arith.constant 0 : index
    %58 = vector.load %arg9[%c0_57, %c0_58] : memref<1x32xf32, #tpu.memory_space<vmem>>, vector<1x32xf32>
    %59 = vector.broadcast %58 : vector<1x32xf32> to vector<16x32xf32>
    %60 = arith.addf %57, %59 : vector<16x32xf32>
    %cst_59 = arith.constant 0.000000e+00 : f32
    %61 = vector.broadcast %cst_59 : f32 to vector<16x32xf32>
    %62 = arith.maximumf %60, %61 : vector<16x32xf32>
    %c8_60 = arith.constant 8 : index
    %c0_61 = arith.constant 0 : index
    %63 = vector.load %arg15[%c8_60, %c0_61] : memref<24x32xf32, #tpu.memory_space<vmem>>, vector<16x32xf32>
    tpu.vector_store %arg15[%c8_60, %c0_61], %62 {strides = array<i32>} : memref<24x32xf32, #tpu.memory_space<vmem>>, vector<16x32xf32>,
    %cst_62 = arith.constant 0.000000e+00 : f32
    %64 = vector.broadcast %cst_62 : f32 to vector<16x32xf32>
    %c6_63 = arith.constant 6 : index
    %c0_64 = arith.constant 0 : index
    %65 = vector.load %arg15[%c6_63, %c0_64] : memref<24x32xf32, #tpu.memory_space<vmem>>, vector<16x32xf32>
    %c0_65 = arith.constant 0 : index
    %c0_66 = arith.constant 0 : index
    %c0_67 = arith.constant 0 : index
    %66 = vector.load %arg10[%c0_65, %c0_66, %c0_67] : memref<2x32x32xf32, #tpu.memory_space<vmem>>, vector<1x32x32xf32>
    %67 = vector.shape_cast %66 : vector<1x32x32xf32> to vector<32x32xf32>
    %cst_68 = arith.constant dense<0.000000e+00> : vector<16x32xf32>
    %68 = tpu.matmul %65, %67, %cst_68 {dimension_numbers = #tpu.dot_dimension_numbers<[1], [0], [0], [1], [0, 0, 1, 1], [], []>} : vector<16x32xf32>, vector<32x32xf32>, vector<16x32xf32> -> vector<16x32xf32>
    %69 = arith.addf %64, %68 : vector<16x32xf32>
    %c8_69 = arith.constant 8 : index
    %c0_70 = arith.constant 0 : index
    %70 = vector.load %arg15[%c8_69, %c0_70] : memref<24x32xf32, #tpu.memory_space<vmem>>, vector<16x32xf32>
    %c1_71 = arith.constant 1 : index
    %c0_72 = arith.constant 0 : index
    %c0_73 = arith.constant 0 : index
    %71 = vector.load %arg10[%c1_71, %c0_72, %c0_73] : memref<2x32x32xf32, #tpu.memory_space<vmem>>, vector<1x32x32xf32>
    %72 = vector.shape_cast %71 : vector<1x32x32xf32> to vector<32x32xf32>
    %cst_74 = arith.constant dense<0.000000e+00> : vector<16x32xf32>
    %73 = tpu.matmul %70, %72, %cst_74 {dimension_numbers = #tpu.dot_dimension_numbers<[1], [0], [0], [1], [0, 0, 1, 1], [], []>} : vector<16x32xf32>, vector<32x32xf32>, vector<16x32xf32> -> vector<16x32xf32>
    %74 = arith.addf %69, %73 : vector<16x32xf32>
    %c0_75 = arith.constant 0 : index
    %c0_76 = arith.constant 0 : index
    %75 = vector.load %arg11[%c0_75, %c0_76] : memref<1x32xf32, #tpu.memory_space<vmem>>, vector<1x32xf32>
    %76 = vector.broadcast %75 : vector<1x32xf32> to vector<16x32xf32>
    %77 = arith.addf %74, %76 : vector<16x32xf32>
    %cst_77 = arith.constant 0.000000e+00 : f32
    %78 = vector.broadcast %cst_77 : f32 to vector<16x32xf32>
    %79 = arith.maximumf %77, %78 : vector<16x32xf32>
    %80 = arith.addf %79, %45 : vector<16x32xf32>
    %cst_78 = arith.constant 0.000000e+00 : f32
    %81 = vector.broadcast %cst_78 : f32 to vector<16x32xf32>
    %82 = arith.maximumf %80, %81 : vector<16x32xf32>
    %83 = vector.extract_strided_slice %82 {offsets = [15, 0], sizes = [1, 32], strides = [1, 1]} : vector<16x32xf32> to vector<1x32xf32>
    %c0_79 = arith.constant 0 : index
    %c0_80 = arith.constant 0 : index
    %84 = vector.load %arg12[%c0_79, %c0_80] : memref<32x9xf32, #tpu.memory_space<vmem>>, vector<32x9xf32>
    %cst_81 = arith.constant dense<0.000000e+00> : vector<1x9xf32>
    %85 = tpu.matmul %83, %84, %cst_81 {dimension_numbers = #tpu.dot_dimension_numbers<[1], [0], [0], [1], [0, 0, 1, 1], [], []>} : vector<1x32xf32>, vector<32x9xf32>, vector<1x9xf32> -> vector<1x9xf32>
    %c0_82 = arith.constant 0 : index
    %c0_83 = arith.constant 0 : index
    %86 = vector.load %arg13[%c0_82, %c0_83] : memref<1x9xf32, #tpu.memory_space<vmem>>, vector<1x9xf32>
    %87 = arith.addf %85, %86 : vector<1x9xf32>
    %c0_84 = arith.constant 0 : index
    %c0_85 = arith.constant 0 : index
    %c0_86 = arith.constant 0 : index
    %88 = vector.load %arg14[%c0_84, %c0_85, %c0_86] : memref<1x1x9xf32, #tpu.memory_space<vmem>>, vector<1x1x9xf32>
    %89 = vector.shape_cast %88 : vector<1x1x9xf32> to vector<1x9xf32>
    %90 = vector.shape_cast %87 : vector<1x9xf32> to vector<1x1x9xf32>
    tpu.vector_store %arg14[%c0_84, %c0_85, %c0_86], %90 {strides = array<i32>} : memref<1x1x9xf32, #tpu.memory_space<vmem>>, vector<1x1x9xf32>,
    return
  }
  func.func @transform_0(%arg0: i32) -> (i32, i32, i32) {
    %c0_i32 = arith.constant 0 : i32
    %c0_i32_0 = arith.constant 0 : i32
    %c0_i32_1 = arith.constant 0 : i32
    return %arg0, %c0_i32, %c0_i32_0 : i32, i32, i32
  }
  func.func @transform_1(%arg0: i32) -> (i32, i32, i32) {
    %c0_i32 = arith.constant 0 : i32
    %c0_i32_0 = arith.constant 0 : i32
    %c0_i32_1 = arith.constant 0 : i32
    %c0_i32_2 = arith.constant 0 : i32
    return %c0_i32, %c0_i32_0, %c0_i32_1 : i32, i32, i32
  }
  func.func @transform_2(%arg0: i32) -> (i32, i32) {
    %c0_i32 = arith.constant 0 : i32
    %c0_i32_0 = arith.constant 0 : i32
    %c0_i32_1 = arith.constant 0 : i32
    return %c0_i32, %c0_i32_0 : i32, i32
  }
  func.func @transform_3(%arg0: i32) -> (i32, i32, i32) {
    %c0_i32 = arith.constant 0 : i32
    %c0_i32_0 = arith.constant 0 : i32
    %c0_i32_1 = arith.constant 0 : i32
    %c0_i32_2 = arith.constant 0 : i32
    return %c0_i32, %c0_i32_0, %c0_i32_1 : i32, i32, i32
  }
  func.func @transform_4(%arg0: i32) -> (i32, i32) {
    %c0_i32 = arith.constant 0 : i32
    %c0_i32_0 = arith.constant 0 : i32
    %c0_i32_1 = arith.constant 0 : i32
    return %c0_i32, %c0_i32_0 : i32, i32
  }
  func.func @transform_5(%arg0: i32) -> (i32, i32) {
    %c0_i32 = arith.constant 0 : i32
    %c0_i32_0 = arith.constant 0 : i32
    %c0_i32_1 = arith.constant 0 : i32
    return %c0_i32, %c0_i32_0 : i32, i32
  }
  func.func @transform_6(%arg0: i32) -> (i32, i32) {
    %c0_i32 = arith.constant 0 : i32
    %c0_i32_0 = arith.constant 0 : i32
    %c0_i32_1 = arith.constant 0 : i32
    return %c0_i32, %c0_i32_0 : i32, i32
  }
  func.func @transform_7(%arg0: i32) -> (i32, i32, i32) {
    %c0_i32 = arith.constant 0 : i32
    %c0_i32_0 = arith.constant 0 : i32
    %c0_i32_1 = arith.constant 0 : i32
    %c0_i32_2 = arith.constant 0 : i32
    return %c0_i32, %c0_i32_0, %c0_i32_1 : i32, i32, i32
  }
  func.func @transform_8(%arg0: i32) -> (i32, i32) {
    %c0_i32 = arith.constant 0 : i32
    %c0_i32_0 = arith.constant 0 : i32
    %c0_i32_1 = arith.constant 0 : i32
    return %c0_i32, %c0_i32_0 : i32, i32
  }
  func.func @transform_9(%arg0: i32) -> (i32, i32, i32) {
    %c0_i32 = arith.constant 0 : i32
    %c0_i32_0 = arith.constant 0 : i32
    %c0_i32_1 = arith.constant 0 : i32
    %c0_i32_2 = arith.constant 0 : i32
    return %c0_i32, %c0_i32_0, %c0_i32_1 : i32, i32, i32
  }
  func.func @transform_10(%arg0: i32) -> (i32, i32) {
    %c0_i32 = arith.constant 0 : i32
    %c0_i32_0 = arith.constant 0 : i32
    %c0_i32_1 = arith.constant 0 : i32
    return %c0_i32, %c0_i32_0 : i32, i32
  }
  func.func @transform_11(%arg0: i32) -> (i32, i32) {
    %c0_i32 = arith.constant 0 : i32
    %c0_i32_0 = arith.constant 0 : i32
    %c0_i32_1 = arith.constant 0 : i32
    return %c0_i32, %c0_i32_0 : i32, i32
  }
  func.func @transform_12(%arg0: i32) -> (i32, i32) {
    %c0_i32 = arith.constant 0 : i32
    %c0_i32_0 = arith.constant 0 : i32
    %c0_i32_1 = arith.constant 0 : i32
    return %c0_i32, %c0_i32_0 : i32, i32
  }
  func.func @transform_13(%arg0: i32) -> (i32, i32, i32) {
    %c0_i32 = arith.constant 0 : i32
    %c0_i32_0 = arith.constant 0 : i32
    %c0_i32_1 = arith.constant 0 : i32
    return %arg0, %c0_i32, %c0_i32_0 : i32, i32, i32
  }
}

</mosaic_0001>

<bundles_post_ra>
// kernel: ledvo_tcn_forward.1
= control target key start
LH: loop header
LB: loop body
LE: loop exit
PB: predicated region body
PF: predicated region fallthrough
CT: control target
= control target key end

     0   :  { %s2829_s0 = inlined_call_operand.vmem [shape: f32[2,16,4], index: 0, kind: input, shape index: {}]   ;;  %s2830_s1 = inlined_call_operand.hbm [shape: f32[2,4,32], index: 1, kind: input, shape index: {}]   ;;  %s2831_s2 = inlined_call_operand.vmem [shape: f32[1,32], index: 2, kind: input, shape index: {}]   ;;  %s2832_s3 = inlined_call_operand.vmem [shape: f32[2,32,32], index: 3, kind: input, shape index: {}]   ;;  %s2833_s4 = inlined_call_operand.hbm [shape: f32[1,32], index: 4, kind: input, shape index: {}]   ;;  %s2834_s5 = inlined_call_operand.hbm [shape: f32[4,32], index: 5, kind: input, shape index: {}]   ;;  %s2835_s6 = inlined_call_operand.hbm [shape: f32[1,32], index: 6, kind: input, shape index: {}]   ;;  %s2836_s7 = inlined_call_operand.hbm [shape: f32[2,32,32], index: 7, kind: input, shape index: {}]   ;;  %s2837_s8 = inlined_call_operand.hbm [shape: f32[1,32], index: 8, kind: input, shape index: {}]   ;;  %s2838_s9 = inlined_call_operand.vmem [shape: f32[2,32,32], index: 9, kind: input, shape index: {}]   ;;  %s2839_s10 = inlined_call_operand.hbm [shape: f32[1,32], index: 10, kind: input, shape index: {}]   ;;  %s2840_s11 = inlined_call_operand.vmem [shape: f32[32,9], index: 11, kind: input, shape index: {}]   ;;  %s2841_s12 = inlined_call_operand.hbm [shape: f32[1,9], index: 12, kind: input, shape index: {}]   ;;  %s2842_s13 = inlined_call_operand.hbm [shape: f32[2,1,9], index: 13, kind: output, shape index: {}]  }
   0x1   :  { %2853 = sst [smem:[#allocation30_spill]] %s2833_s4 }
   0x2   :  { %2854 = sst [smem:[#allocation31_spill]] %s2835_s6 }
   0x3   :  { %2855 = sst [smem:[#allocation32_spill]] %s2842_s13 }
   0x4   :  { %18 = vsyncpa [#allocation4], 0 }
   0x5   :  { %19 = vsyncpa [#allocation7], 0 }
   0x6   :  { %20 = vsyncpa [#allocation10], 0 }
   0x7   :  { %21 = vsyncpa [#allocation13], 0 }
   0x8   :  { %22 = vsyncpa [#allocation16], 0 }
   0x9   :  { %23 = vsyncpa [#allocation5], 0 }
   0xa   :  { %25 = vsyncpa [#allocation5 + $0x1], 0  ;;  %s2407_s25 = smov 0   ;;  %s2409_s26 = smov 0  }
   0xb   :  { %s2411_s27 = smov 0   ;;  %s2413_s28 = smov 0  }
   0xc LB: > { %2856 = sst [smem:[#allocation24_spill]] %s2307_s25  ;;  %s2428_s29 = sadd.s32 4294967295, %s2319_s28   ;;  %s2319_s28 = sphi %s2413_s28, %s2886_s28   ;;  %s2315_s27 = sphi %s2411_s27, %s2888_s27   ;;  %s2311_s26 = sphi %s2409_s26, %s2890_s26   ;;  %s2307_s25 = sphi %s2407_s25, %s2889_s25  }
   0xd   : > { %2857 = sst [smem:[#allocation25_spill]] %s2315_s27  ;;  %s1623_s30 = sadd.s32 4294967294, %s2319_s28  }
   0xe   : > { %2858 = sst [smem:[#allocation26_spill]] %s2319_s28  ;;  %s2432_s14 = sadd.s32 1, %s2319_s28  }
   0xf   : > { %2859 = sst [smem:[#allocation27_spill]] %s2432_s14  ;;  %s316_s15 = sadd.s32 1, %s2315_s27 }
  0x10   : > { %s313_s16 = ssub.s32 %s2319_s28, %s2432_s14  ;;  %p326_p0 = scmp.ne.s32.totalorder %s2315_s27, %s2311_s26 }
  0x11   : > { %p314_p1 = scmp.eq.s32.totalorder %s313_s16, 0  ;;  %p327_p2 = scmp.eq.s32.totalorder %s2428_s29, 1 }
  0x12   : > { %p332_p3 = scmp.ne.s32.totalorder %s2311_s26, %s2307_s25  ;;  %p333_p4 = scmp.eq.s32.totalorder %s1623_s30, 1 }
  0x13   : > { %s2443_s17 = scalar_select %p314_p1, %s2315_s27, %s316_s15  }
  0x14   : > { %p2445_p5 = por %p327_p2, %p326_p0  ;;  %p2449_p6 = por %p333_p4, %p332_p3 }
  0x15   : > { %2860 = sst [smem:[#allocation28_spill]] %s2443_s17  ;;  %p1624_p7 = scmp.ge.s32.totalorder %s2319_s28, 1 }
  0x16   : > { %s2861_s18 = scalar_select %p2445_p5, 1, 0 }
  0x17   : > { %s2862_s19 = scalar_select %p2449_p6, 1, 0 }
  0x18   : > { %p340_p8 = scmp.lt.s32.totalorder %s2319_s28, 3  ;;  %p2848_p9 = scmp.eq.s32.totalorder %s2428_s29, 0 }
  0x19   : > { %2863 = sst [smem:[#allocation29_spill]] %s2862_s19  ;;  %s2321_s21 = smov [#allocation6]  }
  0x1a   : > { %p2456_p10 = pnand %p1624_p7, %p340_p8  ;;  %s372_s22 = sshll.u32 %s2321_s21, 4  ;;  %s373_s22 = int_to_ptr.vmem [resolvable:$true] %s372_s22 }
  0x1b   : > { %s2322_s23 = smov [#allocation9]   ;;  %s2323_s15 = smov [#allocation12]  }
  0x1c   : > { %s2864_s20 = scalar_select %p2456_p10, 1, 0 }
  0x1d   : > { %p1920_p11 = pneg %p2456_p10  ;;  %s394_s24 = sshll.u32 %s2322_s23, 4  ;;  %s2468_s24 = int_to_ptr.vmem [resolvable:$true] %s394_s24 }
  0x1e   : > { %s418_s16 = sshll.u32 %s2323_s15, 4  ;;  %s2866_s4 = sld [smem:[#allocation30_spill]]  ;;  %s2470_s16 = int_to_ptr.vmem [resolvable:$true] %s418_s16 }
  0x1f   : > { %p2464_p12 = pnand %p2848_p9, %p1920_p11 }
  0x21   : > { %p2480_p0 = pneg %p2464_p12 }
  0x24   : > { %s2013_s21 = scalar_lea.hbm %s2866_s4, 16 }
  0x25   : > { %p2014_p13 = scmp.ne.s32.totalorder %s2866_s4, %s2013_s21  ;;  %p2020_p3 = scmp.lt.u32.totalorder %s2013_s21, %s2866_s4 }
  0x27   : > { %p2016_p1 = pnand %p2480_p0, %p2014_p13 }
  0x29   : > { %p2017_p2 = pneg %p2016_p1 }
  0x2b   : > { %p2022_p4 = pnand %p2020_p3, %p2017_p2 }
  0x2d   : > { %2025 = shalt.err (!%p2022_p4)
}
  0x2e   : > { %s2026_s27 = scalar_lea.vmem %s373_s22, 16  ;;  %s2033_s14 = scalar_lea.vmem %s373_s22, 32 }
  0x2f   : > { %p2027_p7 = scmp.ne.s32.totalorder %s373_s22, %s2026_s27  ;;  %p2034_p9 = scmp.lt.s32.totalorder %s373_s22, %s373_s22 }
  0x30   : > { %p2035_p6 = scmp.lt.s32.totalorder %s2033_s14, %s2026_s27 }
  0x31   : > { %p2029_p8 = pnand %p2027_p7, %p2480_p0 }
  0x32   : > { %p2036_p5 = por %p2035_p6, %p2034_p9 }
  0x33   : > { %p2030_p11 = pneg %p2029_p8 }
  0x35   : > { %p2037_p10 = pnand %p2036_p5, %p2030_p11 }
  0x37   : > { %2040 = shalt.err (!%p2037_p10)
}
  0x38   : > { %1926 = dma.hbm_to_vmem [thread:$0]  (!%p2464_p12), %s2866_s4, 16, %s373_s22, [#allocation7]  }
  0x39   : > { %s2868_s6 = sld [smem:[#allocation31_spill]] }
  0x3f   : > { %s2041_s15 = scalar_lea.hbm %s2868_s6, 16 }
  0x40   : > { %p2042_p13 = scmp.ne.s32.totalorder %s2868_s6, %s2041_s15  ;;  %p2048_p5 = scmp.lt.u32.totalorder %s2041_s15, %s2868_s6 }
  0x42   : > { %p2044_p1 = pnand %p2042_p13, %p2480_p0 }
  0x44   : > { %p2045_p6 = pneg %p2044_p1 }
  0x46   : > { %p2050_p9 = pnand %p2048_p5, %p2045_p6 }
  0x48   : > { %2053 = shalt.err (!%p2050_p9)
}
  0x49   : > { %s2054_s22 = scalar_lea.vmem %s2468_s24, 16  ;;  %s2061_s13 = scalar_lea.vmem %s2468_s24, 32 }
  0x4a   : > { %p2055_p10 = scmp.ne.s32.totalorder %s2468_s24, %s2054_s22  ;;  %p2062_p4 = scmp.lt.s32.totalorder %s2468_s24, %s2468_s24 }
  0x4b   : > { %p2063_p7 = scmp.lt.s32.totalorder %s2061_s13, %s2054_s22 }
  0x4c   : > { %p2057_p2 = pnand %p2055_p10, %p2480_p0 }
  0x4d   : > { %p2064_p8 = por %p2063_p7, %p2062_p4 }
  0x4e   : > { %p2058_p3 = pneg %p2057_p2 }
  0x50   : > { %p2065_p11 = pnand %p2064_p8, %p2058_p3 }
  0x52   : > { %2068 = shalt.err (!%p2065_p11)
}
  0x53   : > { %1932 = dma.hbm_to_vmem [thread:$0]  (!%p2464_p12), %s2868_s6, 16, %s2468_s24, [#allocation10]  }
  0x54   : > { %s2069_s21 = scalar_lea.hbm %s2837_s8, 16 }
  0x55   : > { %p2070_p13 = scmp.ne.s32.totalorder %s2837_s8, %s2069_s21  ;;  %p2076_p5 = scmp.lt.u32.totalorder %s2069_s21, %s2837_s8 }
  0x57   : > { %p2072_p1 = pnand %p2070_p13, %p2480_p0 }
  0x59   : > { %p2073_p6 = pneg %p2072_p1 }
  0x5b   : > { %p2078_p9 = pnand %p2076_p5, %p2073_p6 }
  0x5d   : > { %2081 = shalt.err (!%p2078_p9)
}
  0x5e   : > { %s2082_s24 = scalar_lea.vmem %s2470_s16, 16  ;;  %s2089_s13 = scalar_lea.vmem %s2470_s16, 32 }
  0x5f   : > { %p2083_p10 = scmp.ne.s32.totalorder %s2470_s16, %s2082_s24  ;;  %p2090_p4 = scmp.lt.s32.totalorder %s2470_s16, %s2470_s16 }
  0x60   : > { %p2091_p7 = scmp.lt.s32.totalorder %s2089_s13, %s2082_s24 }
  0x61   : > { %p2085_p2 = pnand %p2083_p10, %p2480_p0 }
  0x62   : > { %p2092_p8 = por %p2091_p7, %p2090_p4 }
  0x63   : > { %p2086_p3 = pneg %p2085_p2 }
  0x65   : > { %p2093_p11 = pnand %p2092_p8, %p2086_p3 }
  0x67   : > { %2096 = shalt.err (!%p2093_p11)
}
  0x68   : > { %1938 = dma.hbm_to_vmem [thread:$0]  (!%p2464_p12), %s2837_s8, 16, %s2470_s16, [#allocation13]  }
  0x69   : > { %s2324_s19 = smov [#allocation3]   ;;  %s2097_s27 = scalar_lea.hbm %s2830_s1, 128 }
  0x6a   : > { %s352_s25 = sshll.u32 %s2324_s19, 4  ;;  %p2098_p13 = scmp.ne.s32.totalorder %s2830_s1, %s2097_s27  ;;  %s353_s25 = int_to_ptr.vmem [resolvable:$true] %s352_s25 }
  0x6b   : > { %p2104_p5 = scmp.lt.u32.totalorder %s2097_s27, %s2830_s1 }
  0x6c   : > { %p2100_p1 = pnand %p2098_p13, %p2480_p0 }
  0x6e   : > { %p2101_p6 = pneg %p2100_p1 }
  0x70   : > { %p2106_p9 = pnand %p2104_p5, %p2101_p6 }
  0x72   : > { %2109 = shalt.err (!%p2106_p9)
}
  0x73   : > { %s2110_s16 = scalar_lea.vmem %s353_s25, 128  ;;  %p2118_p4 = scmp.lt.s32.totalorder %s353_s25, %s353_s25 }
  0x74   : > { %p2111_p10 = scmp.ne.s32.totalorder %s353_s25, %s2110_s16  ;;  %p2119_p7 = scmp.lt.s32.totalorder %s2110_s16, %s2110_s16 }
  0x76   : > { %p2113_p2 = pnand %p2111_p10, %p2480_p0  ;;  %p2120_p8 = por %p2119_p7, %p2118_p4 }
  0x78   : > { %p2114_p3 = pneg %p2113_p2 }
  0x7a   : > { %p2121_p11 = pnand %p2120_p8, %p2114_p3 }
  0x7c   : > { %2124 = shalt.err (!%p2121_p11)
}
  0x7d   : > { %s2325_s28 = smov 64   ;;  %s2326_s17 = smov 4  }
  0x7e   : > { %1923 = dma.hbm_to_vmem [thread:$0]  (!%p2464_p12), %s2830_s1, 128, %s353_s25, [#allocation4], %s2325_s28, %s2325_s28, %s2326_s17  }
  0x7f   : > { %s2327_s15 = smov [#allocation8]   ;;  %s2328_s14 = smov [#allocation11]  }
  0x80   : > { %s383_s27 = sshll.u32 %s2327_s15, 4  ;;  %s404_s22 = sshll.u32 %s2328_s14, 4  ;;  %s384_s27 = int_to_ptr.vmem [resolvable:$true] %s383_s27  ;;  %s2562_s22 = int_to_ptr.vmem [resolvable:$true] %s404_s22 }
  0x81   : > { %s2125_s16 = scalar_lea.hbm %s2834_s5, 64 }
  0x82   : > { %p2126_p13 = scmp.ne.s32.totalorder %s2834_s5, %s2125_s16  ;;  %p2132_p5 = scmp.lt.u32.totalorder %s2125_s16, %s2834_s5 }
  0x84   : > { %p2128_p1 = pnand %p2126_p13, %p2480_p0 }
  0x86   : > { %p2129_p6 = pneg %p2128_p1 }
  0x88   : > { %p2134_p9 = pnand %p2132_p5, %p2129_p6 }
  0x8a   : > { %2137 = shalt.err (!%p2134_p9)
}
  0x8b   : > { %s2138_s28 = scalar_lea.vmem %s384_s27, 64  ;;  %p2146_p4 = scmp.lt.s32.totalorder %s384_s27, %s384_s27 }
  0x8c   : > { %p2139_p10 = scmp.ne.s32.totalorder %s384_s27, %s2138_s28  ;;  %p2147_p7 = scmp.lt.s32.totalorder %s2138_s28, %s2138_s28 }
  0x8e   : > { %p2141_p2 = pnand %p2139_p10, %p2480_p0  ;;  %p2148_p8 = por %p2147_p7, %p2146_p4 }
  0x90   : > { %p2142_p3 = pneg %p2141_p2 }
  0x92   : > { %p2149_p11 = pnand %p2148_p8, %p2142_p3 }
  0x94   : > { %2152 = shalt.err (!%p2149_p11)
}
  0x95   : > { %1929 = dma.hbm_to_vmem [thread:$0]  (!%p2464_p12), %s2834_s5, 64, %s384_s27, [#allocation7]  }
  0x96   : > { %s2153_s15 = scalar_lea.hbm %s2836_s7, 1024 }
  0x97   : > { %p2154_p13 = scmp.ne.s32.totalorder %s2836_s7, %s2153_s15  ;;  %p2160_p5 = scmp.lt.u32.totalorder %s2153_s15, %s2836_s7 }
  0x99   : > { %p2156_p1 = pnand %p2154_p13, %p2480_p0 }
  0x9b   : > { %p2157_p6 = pneg %p2156_p1 }
  0x9d   : > { %p2162_p9 = pnand %p2160_p5, %p2157_p6 }
  0x9f   : > { %2165 = shalt.err (!%p2162_p9)
}
  0xa0   : > { %s2166_s27 = scalar_lea.vmem %s2562_s22, 1024  ;;  %p2174_p4 = scmp.lt.s32.totalorder %s2562_s22, %s2562_s22 }
  0xa1   : > { %p2167_p10 = scmp.ne.s32.totalorder %s2562_s22, %s2166_s27  ;;  %p2175_p7 = scmp.lt.s32.totalorder %s2166_s27, %s2166_s27 }
  0xa3   : > { %p2169_p2 = pnand %p2167_p10, %p2480_p0  ;;  %p2176_p8 = por %p2175_p7, %p2174_p4 }
  0xa5   : > { %p2170_p3 = pneg %p2169_p2 }
  0xa7   : > { %p2177_p11 = pnand %p2176_p8, %p2170_p3 }
  0xa9   : > { %2180 = shalt.err (!%p2177_p11)
}
  0xaa   : > { %s2329_s19 = smov 128   ;;  %s2330_s25 = smov 8  }
  0xab   : > { %1935 = dma.hbm_to_vmem [thread:$0]  (!%p2464_p12), %s2836_s7, 1024, %s2562_s22, [#allocation10], %s2329_s19, %s2329_s19, %s2330_s25  }
  0xac   : > { %s2331_s6 = smov [#allocation14]   ;;  %s2332_s21 = smov [#allocation15]  }
  0xad   : > { %s432_s17 = sshll.u32 %s2331_s6, 4  ;;  %s446_s15 = sshll.u32 %s2332_s21, 4  ;;  %s433_s17 = int_to_ptr.vmem [resolvable:$true] %s432_s17  ;;  %s2605_s15 = int_to_ptr.vmem [resolvable:$true] %s446_s15 }
  0xae   : > { %s2181_s13 = scalar_lea.hbm %s2839_s10, 16 }
  0xaf   : > { %p2182_p13 = scmp.ne.s32.totalorder %s2839_s10, %s2181_s13  ;;  %p2188_p5 = scmp.lt.u32.totalorder %s2181_s13, %s2839_s10 }
  0xb1   : > { %p2184_p1 = pnand %p2182_p13, %p2480_p0 }
  0xb3   : > { %p2185_p6 = pneg %p2184_p1 }
  0xb5   : > { %p2190_p9 = pnand %p2188_p5, %p2185_p6 }
  0xb7   : > { %2193 = shalt.err (!%p2190_p9)
}
  0xb8   : > { %s2194_s19 = scalar_lea.vmem %s433_s17, 16  ;;  %s2201_s25 = scalar_lea.vmem %s433_s17, 32 }
  0xb9   : > { %p2195_p10 = scmp.ne.s32.totalorder %s433_s17, %s2194_s19  ;;  %p2202_p4 = scmp.lt.s32.totalorder %s433_s17, %s433_s17 }
  0xba   : > { %p2203_p7 = scmp.lt.s32.totalorder %s2201_s25, %s2194_s19 }
  0xbb   : > { %p2197_p2 = pnand %p2195_p10, %p2480_p0 }
  0xbc   : > { %p2204_p8 = por %p2203_p7, %p2202_p4 }
  0xbd   : > { %p2198_p3 = pneg %p2197_p2 }
  0xbf   : > { %p2205_p11 = pnand %p2204_p8, %p2198_p3 }
  0xc1   : > { %2208 = shalt.err (!%p2205_p11)
}
  0xc2   : > { %1941 = dma.hbm_to_vmem [thread:$0]  (!%p2464_p12), %s2839_s10, 16, %s433_s17, [#allocation13]  }
  0xc3   : > { %s2209_s24 = scalar_lea.hbm %s2841_s12, 16 }
  0xc4   : > { %p2210_p13 = scmp.ne.s32.totalorder %s2841_s12, %s2209_s24  ;;  %p2216_p5 = scmp.lt.u32.totalorder %s2209_s24, %s2841_s12 }
  0xc6   : > { %p2212_p1 = pnand %p2210_p13, %p2480_p0 }
  0xc8   : > { %p2213_p6 = pneg %p2212_p1 }
  0xca   : > { %p2218_p9 = pnand %p2216_p5, %p2213_p6 }
  0xcc   : > { %2221 = shalt.err (!%p2218_p9)
}
  0xcd   : > { %s2222_s17 = scalar_lea.vmem %s2605_s15, 16  ;;  %s2229_s22 = scalar_lea.vmem %s2605_s15, 32 }
  0xce   : > { %p2223_p10 = scmp.ne.s32.totalorder %s2605_s15, %s2222_s17  ;;  %p2230_p4 = scmp.lt.s32.totalorder %s2605_s15, %s2605_s15 }
  0xcf   : > { %p2231_p7 = scmp.lt.s32.totalorder %s2229_s22, %s2222_s17 }
  0xd0   : > { %p2225_p2 = pnand %p2223_p10, %p2480_p0 }
  0xd1   : > { %p2232_p8 = por %p2231_p7, %p2230_p4 }
  0xd2   : > { %p2226_p3 = pneg %p2225_p2 }
  0xd4   : > { %p2233_p11 = pnand %p2232_p8, %p2226_p3 }
  0xd6   : > { %2236 = shalt.err (!%p2233_p11)
}
  0xd7   : > { %1944 = dma.hbm_to_vmem [thread:$0]  (!%p2464_p12), %s2841_s12, 16, %s2605_s15, [#allocation16]  }
  0xd8   : > { %p2869_p13 = scmp.ne.s32.totalorder %s2864_s20, 0 }
  0xd9   : > { %p2870_p0 = scmp.eq.s32.totalorder (!%p2869_p13), %s2428_s29, 0 }
  0xda   : > { %467 = sbr.rel (%p2869_p13) target bundleno = 1420 (0x58c), region = 72 }
  0xe1   : > { %2282 = dma.done.wait (%p2870_p0), [#allocation4], 128   ;;  %p2871_p1 = pmov %p2870_p0 }
  0xe2   : > { %p2872_p6 = pmov %p2870_p0 }
  0xe3   : > { %2284 = vsyncadd (%p2871_p1), [#allocation4], 4294967168 }
  0xe4   : > { %2286 = dma.done.wait (%p2872_p6), [#allocation7], 80   ;;  %p2873_p5 = pmov %p2870_p0 }
  0xe5   : > { %p2874_p9 = pmov %p2870_p0 }
  0xe6   : > { %2288 = vsyncadd (%p2873_p5), [#allocation7], 4294967216 }
  0xe7   : > { %2290 = dma.done.wait (%p2874_p9), [#allocation10], 1040   ;;  %p2875_p12 = pmov %p2870_p0 }
  0xe8   : > { %p2876_p10 = pmov %p2870_p0 }
  0xe9   : > { %2292 = vsyncadd (%p2875_p12), [#allocation10], 4294966256 }
  0xea   : > { %2294 = dma.done.wait (%p2876_p10), [#allocation13], 32   ;;  %p2877_p2 = pmov %p2870_p0 }
  0xeb   : > { %p2878_p3 = pmov %p2870_p0 }
  0xec   : > { %2296 = vsyncadd (%p2877_p2), [#allocation13], 4294967264 }
  0xed   : > { %2298 = dma.done.wait (%p2878_p3), [#allocation16], 16   ;;  %p2879_p4 = pmov %p2870_p0 }
  0xee   : > { %p538_p7 = scmp.lt.s32.totalorder %s2428_s29, 1  ;;  %vm543_vm0 = vcmask 261120   ;;  %v2333_v0 = vmov 0.0   ;;  %vm563_vm1 = vcmask 1043456   ;;  %vm547_vm2 = vcmask 31744   ;;  %v1652_v9 = vld [vmem:[%s2832_s3 + $0x20] sm:$0xff] }
  0xef   : > { %2300 = vsyncadd (%p2879_p4), [#allocation16], 4294967280  ;;  %544 = vst.msk [vmem:[#allocation2] sm:$0xff] %vm543_vm0, %v2333_v0  ;;  %v556_v1 = vld [vmem:[#allocation3 + $0x4] sm:$0xf]  ;;  %v1653_v10 = vld [vmem:[%s2832_s3 + $0x28] sm:$0xff] }
  0xf0   : > { %s539_s20 = scalar_select %p538_p7, %s2428_s29, 1  ;;  %1734 = vmatprep.subr.msk.mxu0 %vm563_vm1, %v556_v1  ;;  %v552_v4 = vld [vmem:[#allocation3] sm:$0xf]  ;;  %v1826_v11 = vpack.c.bf16 %v1653_v10, %v1652_v9  ;;  %v1654_v12 = vld [vmem:[%s2832_s3 + $0x30] sm:$0xff]  ;;  %v741_v15 = vld [vmem:[%s2832_s3] sm:$0xff]  ;;  %vm2335_vm3 = vmmov 0  }
  0xf1   : > { %1735 = vmatpush3.msk.msra.mxu0 %vm563_vm1, %v556_v1  ;;  %v1655_v13 = vld [vmem:[%s2832_s3 + $0x38] sm:$0xff]  ;;  %v742_v16 = vld [vmem:[%s2832_s3 + $0x8] sm:$0xff]  ;;  %v925_v18 = vld [vmem:[#allocation8] sm:$0xf]  ;;  %s536_s17 = sand.u32 1, %s2311_s26   ;;  %s1680_s22 = sshll.u32 %s2428_s29, 4 }
  0xf2   : > { %s1683_s30 = sshll.u32 %s539_s20, 4  ;;  %1739 = vmatprep.subr.msk.mxu0 %vm563_vm1, %v552_v4  ;;  %1827 = vmatprep.subr.bf16.mxu1 %v1826_v11  ;;  %v1830_v14 = vpack.c.bf16 %v1655_v13, %v1654_v12  ;;  %v1834_v17 = vpack.c.bf16 %v742_v16, %v741_v15  ;;  %v1651_v19 = vld [vmem:[%s2831_s2] ss:$0 sm:$0xff]  ;;  %v743_v26 = vld [vmem:[%s2832_s3 + $0x10] sm:$0xff]  ;;  %v744_v27 = vld [vmem:[%s2832_s3 + $0x18] sm:$0xff]  ;;  %s537_s19 = scalar_lea.vmem [#allocation17], %s536_s17 }
  0xf3   : > { %s542_s4 = scalar_lea.vmem %s2829_s0, %s1683_s30  ;;  %1829 = vmatpush3.bf16.msra.mxu1 %v1826_v11  ;;  %v1838_v29 = vpack.c.bf16 %v744_v27, %v743_v26  ;;  %v1032_v35 = vld [vmem:[#allocation11 + $0x20] sm:$0xff]  ;;  %v1033_v36 = vld [vmem:[#allocation11 + $0x28] sm:$0xff]  ;;  %v1034_v38 = vld [vmem:[#allocation11 + $0x30] sm:$0xff]  ;;  %s1489_s25 = sshll.u32 %s537_s19, 4  ;;  %vm1474_vm4 = vcmask 65536   ;;  %s2789_s25 = int_to_ptr.vmem [resolvable:$true] %s1489_s25 }
  0xf4   : > { %v545_v2 = vld [vmem:[%s542_s4] sm:$0xff]  ;;  %v546_v3 = vld [vmem:[%s542_s4 + $0x8] sm:$0xff]  ;;  %1831 = vmatprep.subr.bf16.mxu1 %v1830_v14  ;;  %v1842_v37 = vpack.c.bf16 %v1033_v36, %v1032_v35  ;;  %v1026_v42 = vld [vmem:[#allocation11 + $0x8] sm:$0xff]  ;;  %s2880_s23 = sld [smem:[#allocation32_spill]]  ;;  %s1477_s4 = scalar_lea.sflag [#allocation5], %s536_s17 }
  0xf5   : > { %548 = vst.msk [vmem:[#allocation2 + $0x8] sm:$0xff] %vm547_vm2, %v545_v2  ;;  %549 = vst.msk [vmem:[#allocation2 + $0x10] sm:$0xff] %vm547_vm2, %v546_v3  ;;  %v1035_v39 = vld [vmem:[#allocation11 + $0x38] sm:$0xff]  ;;  %v1025_v41 = vld [vmem:[#allocation11] sm:$0xff]  ;;  %s2237_s6 = scalar_lea.vmem %s2789_s25, 16  ;;  %p2881_p11 = scmp.ne.s32.totalorder %s2861_s18, 0 }
  0xf6   : > { %v1846_v40 = vpack.c.bf16 %v1035_v39, %v1034_v38  ;;  %v1850_v43 = vpack.c.bf16 %v1026_v42, %v1025_v41  ;;  %v1660_v44 = vld [vmem:[#allocation6] ss:$0 sm:$0xff]  ;;  %v1661_v45 = vld [vmem:[#allocation9] ss:$0 sm:$0xff]  ;;  %v1027_v58 = vld [vmem:[#allocation11 + $0x10] sm:$0xff]  ;;  %p2238_p8 = scmp.ne.s32.totalorder %s2789_s25, %s2237_s6  ;;  %s2336_s29 = smov [#allocation17]  }
  0xf7   : > { %1833 = vmatpush3.bf16.msra.mxu1 %v1830_v14  ;;  %v1028_v59 = vld [vmem:[#allocation11 + $0x18] sm:$0xff]  ;;  %v1214_v9 = vld [vmem:[%s2838_s9 + $0x8] sm:$0xff]  ;;  %s2241_s21 = sshll.u32 %s2336_s29, 4  ;;  %s2242_s21 = int_to_ptr.vmem [resolvable:$false] %s2241_s21 }
  0xf8   : > { %1835 = vmatprep.subr.bf16.mxu1 %v1834_v17  ;;  %v1854_v61 = vpack.c.bf16 %v1028_v59, %v1027_v58  ;;  %v1669_v11 = vld [vmem:[#allocation12] ss:$0 sm:$0xff]  ;;  %v1678_v35 = vld [vmem:[#allocation14] ss:$0 sm:$0xff]  ;;  %p2239_p13 = pnand %p2238_p8, %p2881_p11  ;;  %s2243_s14 = scalar_lea.vmem %s2242_s21, 32 }
  0xf9   : > { %v1396_v26 = vld [vmem:[%s2840_s11 + $0x8] sm:$0xff]  ;;  %p2244_p1 = scmp.lt.s32.totalorder %s2789_s25, %s2242_s21  ;;  %p2245_p6 = scmp.lt.s32.totalorder %s2243_s14, %s2237_s6 }
  0xfa   : > { %s2787_s15 = scalar_lea.hbm %s2880_s23, %s1680_s22  ;;  %p2240_p0 = pneg %p2239_p13 }
  0xfb   : > { %p2246_p5 = por %p2245_p6, %p2244_p1 }
  0xfc   : > { %v553_v5 = vld [vmem:[#allocation2 + $0x8] sm:$0xff]  ;;  %v554_v6 = vld [vmem:[#allocation2 + $0x10] sm:$0xff] }
  0xfd   : > { %v550_v7 = vld [vmem:[#allocation2 + $0x7] sm:$0xff]  ;;  %1736 = vmatprep.mubr.msk.f32.mxu0 %vm547_vm2, %v553_v5  ;;  %v551_v8 = vld [vmem:[#allocation2 + $0xf] sm:$0xff]  ;;  %p2247_p9 = pnand %p2246_p5, %p2240_p0 }
  0xfe   : > { %1737 = vmatmul.mubr.msk.f32.vlgmr.msra.gmra.mrb[0].mxu0 %vm547_vm2, %v554_v6  ;;  %v1672_v5 = vld [vmem:[%s2838_s9 + $0x30] sm:$0xff]  ;;  %v1673_v6 = vld [vmem:[%s2838_s9 + $0x38] sm:$0xff] }
  0xff   : > { %1740 = vmatpush3.msk.msra.mxu0 %vm563_vm1, %v552_v4  ;;  %1741 = vmatprep.mubr.msk.f32.mxu0 %vm547_vm2, %v550_v7  ;;  %v1862_v7 = vpack.c.bf16 %v1673_v6, %v1672_v5 }
 0x100   : > { %1766 = vmatprep.subr.msk.mxu0 %vm563_vm1, %v925_v18 }
 0x106   : > { %1742 = vmatmul.mubr.msk.f32.vlgmr.msra.gmra.mrb[0].mxu0 %vm547_vm2, %v551_v8  ;;  %v1213_v8 = vld [vmem:[%s2838_s9] sm:$0xff] }
 0x107   : > { %1768 = vmatprep.mubr.msk.f32.mxu0 %vm547_vm2, %v545_v2  ;;  %1767 = vmatpush3.msk.msra.mxu0 %vm563_vm1, %v925_v18  ;;  %v1670_v2 = vld [vmem:[%s2838_s9 + $0x20] sm:$0xff]  ;;  %v1866_v10 = vpack.c.bf16 %v1214_v9, %v1213_v8  ;;  %v1215_v18 = vld [vmem:[%s2838_s9 + $0x10] sm:$0xff] }
 0x108   : > { %1843 = vmatprep.subr.bf16.mxu0 %v1842_v37 }
 0x10a   : > { %1769 = vmatmul.mubr.msk.f32.vlgmr.msra.gmra.mrb[2].mxu0 %vm547_vm2, %v546_v3  ;;  %v1671_v3 = vld [vmem:[%s2838_s9 + $0x28] sm:$0xff] }
 0x10b   : > { %1845 = vmatpush3.bf16.msra.mxu0 %v1842_v37  ;;  %v1858_v4 = vpack.c.bf16 %v1671_v3, %v1670_v2 }
 0x10c   : > { %1847 = vmatprep.subr.bf16.mxu0 %v1846_v40 }
 0x10f   : > { %1849 = vmatpush3.bf16.msra.mxu0 %v1846_v40 }
 0x110   : > { %1851 = vmatprep.subr.bf16.mxu0 %v1850_v43 }
 0x1d9   : > { %v1743_v20 = vpop.f32.mrb[0].mxu0 }
 0x1da   : > { %v734_v21 = vadd.f32 %v1743_v20, %v1651_v19  ;;  %v717_v22 = vpop.f32.mrb[1].mxu0 }
 0x1db   : > { %v733_v23 = vadd.f32 %v1651_v19, %v717_v22  ;;  %v1216_v19 = vld [vmem:[%s2838_s9 + $0x18] sm:$0xff] }
 0x1dc   : > { %v736_v24 = vmax.f32 %v734_v21, 0.0  ;;  %v1870_v21 = vpack.c.bf16 %v1216_v19, %v1215_v18 }
 0x1dd   : > { %v735_v25 = vmax.f32 %v733_v23, 0.0  ;;  %v1770_v33 = vpop.f32.mrb[2].mxu0 }
 0x1de   : > { %738 = vst.msk [vmem:[#allocation2 + $0x10] sm:$0xff] %vm543_vm0, %v736_v24  ;;  %v1008_v34 = vpop.f32.mrb[3].mxu0  ;;  %v1014_v49 = vadd.f32 %v1770_v33, %v1661_v45 }
 0x1df   : > { %737 = vst.msk [vmem:[#allocation2 + $0x8] sm:$0xff] %vm543_vm0, %v735_v25  ;;  %v1009_v51 = vadd.f32 %v1661_v45, %v1008_v34  ;;  %v1395_v25 = vld [vmem:[%s2840_s11] sm:$0xff] }
 0x1e0   : > { %v1875_v27 = vpack.c.bf16 %v1396_v26, %v1395_v25 }
 0x1e5   : > { %v746_v30 = vld [vmem:[#allocation2 + $0x10] sm:$0xff] }
 0x1e6   : > { %v745_v28 = vld [vmem:[#allocation2 + $0x8] sm:$0xff] }
 0x1e7   : > { %1752 = vmatprep.mubr.msk.f32.mxu1 %vm543_vm0, %v745_v28  ;;  %v739_v31 = vld [vmem:[#allocation2 + $0x7] sm:$0xff]  ;;  %v740_v32 = vld [vmem:[#allocation2 + $0xf] sm:$0xff]  ;;  %v2334_v28 = vmov 0.0|0.0  }
 0x1e8   : > { %1753 = vmatmul.mubr.msk.f32.vlgmr.msra.gmra.mrb[0].mxu1 %vm543_vm0, %v746_v30  ;;  %v1398_v30 = vld [vmem:[%s2840_s11 + $0x18] sm:$0xff] }
 0x1e9   : > { %1837 = vmatpush3.bf16.msra.mxu1 %v1834_v17  ;;  %1763 = vmatprep.mubr.msk.f32.mxu1 %vm543_vm0, %v739_v31 }
 0x1ea   : > { %1839 = vmatprep.subr.bf16.mxu1 %v1838_v29 }
 0x1ed   : > { %1841 = vmatpush3.bf16.msra.mxu1 %v1838_v29  ;;  %v1397_v29 = vld [vmem:[%s2840_s11 + $0x10] sm:$0xff] }
 0x1ee   : > { %1859 = vmatprep.subr.bf16.mxu1 %v1858_v4  ;;  %v1878_v31 = vpack.c.bf16 %v1398_v30, %v1397_v29 }
 0x1f0   : > { %1764 = vmatmul.mubr.msk.f32.vlgmr.msra.gmra.mrb[0].mxu1 %vm543_vm0, %v740_v32 }
 0x1f1   : > { %1861 = vmatpush3.bf16.msra.mxu1 %v1858_v4 }
 0x1f2   : > { %1863 = vmatprep.subr.bf16.mxu1 %v1862_v7 }
 0x1f5   : > { %1865 = vmatpush3.bf16.msra.mxu1 %v1862_v7 }
 0x1f6   : > { %1867 = vmatprep.subr.bf16.mxu1 %v1866_v10 }
 0x2c3   : > { %v1765_v46 = vpop.f32.mrb[0].mxu1 }
 0x2c4   : > { %v922_v47 = vadd.f32 %v1765_v46, %v1660_v44  ;;  %v905_v48 = vpop.f32.mrb[1].mxu1 }
 0x2c5   : > { %v921_v50 = vadd.f32 %v1660_v44, %v905_v48 }
 0x2c6   : > { %v924_v52 = vmax.f32 %v922_v47, 0.0 }
 0x2c7   : > { %v923_v53 = vmax.f32 %v921_v50, 0.0 }
 0x2c8   : > { %v2725_v54 = vadd.f32 %v1014_v49, %v924_v52 }
 0x2c9   : > { %v1017_v55 = vadd.f32 %v1009_v51, %v923_v53 }
 0x2ca   : > { %v1020_v56 = vmax.f32 %v2725_v54, 0.0 }
 0x2cb   : > { %v1019_v57 = vmax.f32 %v1017_v55, 0.0 }
 0x2cc   : > { %1022 = vst.msk [vmem:[#allocation2 + $0x10] sm:$0xff] %vm543_vm0, %v1020_v56 }
 0x2cd   : > { %1021 = vst.msk [vmem:[#allocation2 + $0x8] sm:$0xff] %vm543_vm0, %v1019_v57 }
 0x2d3   : > { %v1030_v62 = vld [vmem:[#allocation2 + $0x10] sm:$0xff] }
 0x2d4   : > { %v1029_v60 = vld [vmem:[#allocation2 + $0x8] sm:$0xff] }
 0x2d5   : > { %1779 = vmatprep.mubr.msk.f32.mxu0 %vm543_vm0, %v1029_v60  ;;  %v1023_v63 = vld [vmem:[#allocation2 + $0x6] sm:$0xff]  ;;  %v1024_v1 = vld [vmem:[#allocation2 + $0xe] sm:$0xff] }
 0x2d6   : > { %1780 = vmatmul.mubr.msk.f32.vlgmr.msra.gmra.mrb[4].mxu0 %vm543_vm0, %v1030_v62 }
 0x2d7   : > { %1853 = vmatpush3.bf16.msra.mxu0 %v1850_v43  ;;  %1790 = vmatprep.mubr.msk.f32.mxu0 %vm543_vm0, %v1023_v63  ;;  %v1399_v43 = vld [vmem:[#allocation15] sm:$0x1] }
 0x2d8   : > { %1855 = vmatprep.subr.bf16.mxu0 %v1854_v61 }
 0x2db   : > { %1857 = vmatpush3.bf16.msra.mxu0 %v1854_v61 }
 0x2dc   : > { %1874 = vmatprep.subr.bf16.mxu0 %v2334_v28 }
 0x2de   : > { %1791 = vmatmul.mubr.msk.f32.vlgmr.msra.gmra.mrb[4].mxu0 %vm543_vm0, %v1024_v1 }
 0x2df   : > { %1876 = vmatpush3.bf16.msra.mxu0 %v1875_v27  ;;  %1823 = vmatprep.mubr.msk.f32.mxu0 %vm2335_vm3, %v2333_v0 }
 0x2e0   : > { %1877 = vmatprep.subr.bf16.mxu0 %v2334_v28 }
 0x2e3   : > { %1879 = vmatpush3.bf16.msra.mxu0 %v1878_v31 }
 0x3b1   : > { %v1792_v12 = vpop.f32.mrb[4].mxu0 }
 0x3b2   : > { %v1206_v13 = vadd.f32 %v1792_v12, %v1669_v11  ;;  %v1189_v14 = vpop.f32.mrb[5].mxu0 }
 0x3b3   : > { %v1205_v15 = vadd.f32 %v1669_v11, %v1189_v14 }
 0x3b4   : > { %v1208_v16 = vmax.f32 %v1206_v13, 0.0 }
 0x3b5   : > { %v1207_v17 = vmax.f32 %v1205_v15, 0.0 }
 0x3b6   : > { %1210 = vst.msk [vmem:[#allocation2 + $0x10] sm:$0xff] %vm543_vm0, %v1208_v16 }
 0x3b7   : > { %1209 = vst.msk [vmem:[#allocation2 + $0x8] sm:$0xff] %vm543_vm0, %v1207_v17 }
 0x3bd   : > { %v1218_v22 = vld [vmem:[#allocation2 + $0x10] sm:$0xff] }
 0x3be   : > { %v1217_v20 = vld [vmem:[#allocation2 + $0x8] sm:$0xff] }
 0x3bf   : > { %1801 = vmatprep.mubr.msk.f32.mxu1 %vm543_vm0, %v1217_v20  ;;  %v1211_v23 = vld [vmem:[#allocation2 + $0x6] sm:$0xff]  ;;  %v1212_v24 = vld [vmem:[#allocation2 + $0xe] sm:$0xff] }
 0x3c0   : > { %1802 = vmatmul.mubr.msk.f32.vlgmr.msra.gmra.mrb[2].mxu1 %vm543_vm0, %v1218_v22 }
 0x3c1   : > { %1869 = vmatpush3.bf16.msra.mxu1 %v1866_v10  ;;  %1812 = vmatprep.mubr.msk.f32.mxu1 %vm543_vm0, %v1211_v23 }
 0x3c2   : > { %1871 = vmatprep.subr.bf16.mxu1 %v1870_v21 }
 0x3c5   : > { %1873 = vmatpush3.bf16.msra.mxu1 %v1870_v21 }
 0x3c8   : > { %1813 = vmatmul.mubr.msk.f32.vlgmr.msra.gmra.mrb[4].mxu1 %vm543_vm0, %v1212_v24 }
 0x493   : > { %v1803_v32 = vpop.f32.mrb[2].mxu1 }
 0x494   : > { %v1296_v33 = vpop.f32.mrb[3].mxu1 }
 0x49b   : > { %v1814_v34 = vpop.f32.mrb[4].mxu1 }
 0x49c   : > { %v1381_v36 = vadd.f32 %v1814_v34, %v1803_v32  ;;  %v1376_v37 = vpop.f32.mrb[5].mxu1 }
 0x49e   : > { %v1391_v38 = vadd.f32 %v1678_v35, %v1381_v36 }
 0x4a0   : > { %v1392_v39 = vmax.f32 %v1391_v38, 0.0 }
 0x4a2   : > { %v1393_v40 = vadd.f32 %v1392_v39, %v1020_v56 }
 0x4a4   : > { %v1394_v41 = vmax.f32 %v1393_v40, 0.0 }
 0x4a6   : > { %v1401_v42 = vrot.slane %v1394_v41, 7 }
 0x4a8   : > { %1824 = vmatmul.mubr.msk.f32.vlgmr.msra.gmra.mrb[6].mxu0 %vm543_vm0, %v1401_v42 }
 0x57b   : > { %v1470_v0 = vpop.f32.mrb[6].mxu0 }
 0x57c   : > { %v1471_v44 = vadd.f32 %v1470_v0, %v1399_v43  ;;  %v1825_v45 = vpop.f32.mrb[7].mxu0 }
 0x57e   : > { %1475 = vst.msk [vmem:[%s537_s19] sm:$0x1] %vm1474_vm4, %v1471_v44 }
 0x57f   : > { %2250 = shalt.err (!%p2247_p9)
}
 0x580   : > { %s2251_s24 = scalar_lea.hbm %s2787_s15, 16  ;;  %s2255_s27 = scalar_lea.hbm %s2880_s23, 32 }
 0x581   : > { %p2252_p12 = scmp.ne.s32.totalorder %s2787_s15, %s2251_s24  ;;  %p2256_p3 = scmp.lt.u32.totalorder %s2787_s15, %s2880_s23 }
 0x582   : > { %p2257_p4 = scmp.lt.u32.totalorder %s2255_s27, %s2251_s24  ;;  %p2259_p8 = scmp.lt.u32.totalorder %s2251_s24, %s2787_s15 }
 0x583   : > { %p2253_p10 = pnand %p2252_p12, %p2881_p11 }
 0x584   : > { %p2258_p7 = por %p2257_p4, %p2256_p3 }
 0x585   : > { %p2254_p2 = pneg %p2253_p10 }
 0x586   : > { %p2260_p13 = por %p2259_p8, %p2258_p7 }
 0x588   : > { %p2261_p0 = pnand %p2260_p13, %p2254_p2 }
 0x58a   : > { %2264 = shalt.err (!%p2261_p0)
}
 0x58b   : > { %1918 = dma.vmem_to_hbm [thread:$0]  (%p2881_p11), %s2789_s25, 16, %s2787_s15, %s1477_s4  }
 0x58c PF: > { %s2882_s22 = sld [smem:[#allocation26_spill]]  ;;  %s2883_s19 = sld [smem:[#allocation24_spill]] }
 0x58d   : > { %s2884_s20 = sld [smem:[#allocation29_spill]] }
 0x592   : > { %p1965_p1 = scmp.ge.s32.totalorder %s2882_s22, 2  ;;  %s1501_s30 = sand.u32 1, %s2883_s19  }
 0x593   : > { %p2885_p6 = scmp.ne.s32.totalorder %s2884_s20, 0  ;;  %s1502_s6 = scalar_lea.sflag [#allocation5], %s1501_s30 }
 0x595   : > { %p1946_p5 = pnand %p1965_p1, %p2885_p6 }
 0x597   : > { %2302 = dma.done.wait (!%p1946_p5), %s1502_s6, 16  }
 0x598   : > { %2304 = vsyncadd (!%p1946_p5), %s1502_s6, 4294967280  ;;  %s2886_s28 = sld [smem:[#allocation27_spill]]  ;;  %s2887_s29 = sld [smem:[#allocation25_spill]] }
 0x599   : > { %s2888_s27 = sld [smem:[#allocation28_spill]]  ;;  %s2889_s25 = smov %s2311_s26 }
 0x59e   : > { %p28_p9 = scmp.ge.s32.totalorder %s2886_s28, 4   ;;  %s2890_s26 = smov %s2887_s29 }
 0x5a0   :  { %30 = sbr.rel (!%p28_p9) target bundleno = 12 (0xc), region = 144 }
 0x5a7   :  { %1506 = vsyncpa [#allocation4], 1 }
 0x5a8   :  { %1508 = vsyncpa [#allocation4 + $0x1], 1 }
 0x5a9   :  { %1509 = vsyncpa [#allocation7], 1 }
 0x5aa   :  { %1510 = vsyncpa [#allocation10], 1 }
 0x5ab   :  { %1511 = vsyncpa [#allocation13], 1 }
 0x5ac   :  { %1512 = vsyncpa [#allocation16], 1 }
 0x5ad   :  { %1513 = vsyncpa [#allocation5], 1 }
 0x5ae   :  { %1515 = vsyncpa [#allocation5 + $0x1], 1 }

</bundles_post_ra>
